<compile_context>
chip_gen: v6e
topology: v6e:2x2x1
jax: 0.10.0
libtpu: 0.0.40
codegen_flags: <defaults>
</compile_context>

<pallas_src>
import jax
import jax.numpy as jnp
from jax.experimental import pallas as pl
from jax.experimental.pallas import tpu as pltpu

# Small, module-consistent shapes (2048 -> 128 channels, ratio 16, 14 keypoints)
B = 8
C = 128
RATIO = 16
CR = C // RATIO
NKP = 14
OUT = NKP * 2
OUT_PAD = 128          # lane-dense output width (real outputs live in [:, :OUT])


def keypoint_head_kernel(sa_ref, feat_ref, w_ref, bfc_ref, out_ref):
    # feat_ref: (B, C) backbone features; spatial dims are 1x1 so they are dropped.
    # w_ref lane layout: [0:2C) = [wconv_t | wconv_t@w1_t (lane-padded)],
    #                    [2C:3C) = 2*w2_t (K zero-padded), [3C:4C) = wfc (lane-padded).
    f = feat_ref[...]

    # Single MXU push producing BOTH the 1x1-conv output y (first C lanes) and
    # the pre-ReLU hidden of the channel-attention MLP (next CR lanes, zero
    # padded to C).  Folding wconv into fc1 removes one dependent matmul.
    yh = jnp.dot(f, w_ref[:, :2 * C], preferred_element_type=jnp.float32)   # (B, 2C)
    y = yh[:, :C]                                                           # (B, C)
    h = jnp.maximum(yh[:, C:], 0.0)            # (B, C); only first CR lanes nonzero

    # --- ChannelAttention ---
    # AdaptiveAvgPool2d(1) == AdaptiveMaxPool2d(1) == identity on a 1x1 map, so
    # avg_out == max_out and out = sigmoid(2*fc2(relu(fc1(y)))); the factor 2
    # is folded into w2 at pack time, and its K dim is zero-padded so the
    # padded h lanes contribute nothing.
    a = jnp.dot(h, w_ref[:, 2 * C:3 * C], preferred_element_type=jnp.float32)  # (B, C)
    y = jax.nn.sigmoid(a) * y

    # --- SpatialAttention ---
    # mean/max over channels -> (B, 1).  A 7x7 conv (padding=3) on a 1x1 map
    # only sees its center tap (every other tap hits zero padding), plus bias.
    # The 1/C of the mean is folded into sa_ref[0].
    sum_c = jnp.sum(y, axis=1, keepdims=True)                               # (B, 1)
    max_c = jnp.max(y, axis=1, keepdims=True)                               # (B, 1)
    sa = jax.nn.sigmoid(sa_ref[0] * sum_c + sa_ref[1] * max_c + sa_ref[2])
    y = sa * y

    # adaptive_avg_pool2d((1,1)) on a 1x1 map == identity; flatten == (B, C).
    # Final Linear with weight/bias lane-padded to 128 -> lane-dense store.
    out_ref[...] = (jnp.dot(y, w_ref[:, 3 * C:], preferred_element_type=jnp.float32)
                    + bfc_ref[...])


def pack_weights(w_conv, w_fc1, w_fc2, w_sa, b_sa, w_fc, b_fc):
    """One-time weight packing/folding (hoisted out of the per-call path)."""
    wconv_t = jnp.transpose(w_conv.reshape(C, C))             # (Cin, Cout)
    w1_t = jnp.transpose(w_fc1.reshape(CR, C))                # (C, CR)
    w2_t = jnp.transpose(w_fc2.reshape(C, CR))                # (CR, C)

    # Fold the 1x1 conv into fc1: h = relu(f @ (wconv_t @ w1_t)).
    wconv_w1 = jnp.dot(wconv_t, w1_t)                         # (C, CR)

    col_conv = wconv_t                                        # (C, C)
    col_fc1 = jnp.pad(wconv_w1, ((0, 0), (0, C - CR)))        # (C, C)  lane-padded
    col_fc2 = jnp.pad(2.0 * w2_t, ((0, C - CR), (0, 0)))      # (C, C)  K-padded, x2 folded
    col_fc = jnp.pad(jnp.transpose(w_fc), ((0, 0), (0, OUT_PAD - OUT)))   # (C, 128)
    w_all = jnp.concatenate([col_conv, col_fc1, col_fc2, col_fc], axis=1)  # (C, 4C)

    bfc_pad = jnp.pad(b_fc, (0, OUT_PAD - OUT)).reshape(1, OUT_PAD)        # (1, 128)

    # Center tap of the 7x7 spatial-attention conv: [w_avg / C, w_max, bias]
    # (1/C folds the channel-mean into the tap weight).
    sa_params = jnp.array([w_sa[0, 0, 3, 3] / C, w_sa[0, 1, 3, 3], b_sa[0]],
                          dtype=jnp.float32)
    return sa_params, w_all, bfc_pad


@jax.jit
def keypoint_head(feat, sa_params, w_all, bfc_pad):
    cost = pl.CostEstimate(
        flops=2 * B * (C * 2 * C + C * C + C * OUT_PAD),
        transcendentals=B * (C + 1),
        bytes_accessed=4 * (B * C + C * 4 * C + OUT_PAD + B * OUT_PAD),
    )
    out = pl.pallas_call(
        keypoint_head_kernel,
        out_shape=jax.ShapeDtypeStruct((B, OUT_PAD), jnp.float32),
        in_specs=[
            pl.BlockSpec(memory_space=pltpu.MemorySpace.SMEM),   # sa scalars
            pl.BlockSpec(memory_space=pltpu.MemorySpace.VMEM),   # feat (B, C)
            pl.BlockSpec(memory_space=pltpu.MemorySpace.VMEM),   # packed weights (C, 4C)
            pl.BlockSpec(memory_space=pltpu.MemorySpace.VMEM),   # bfc (1, 128)
        ],
        out_specs=pl.BlockSpec(memory_space=pltpu.MemorySpace.VMEM),
        cost_estimate=cost,
    )(sa_params, feat, w_all, bfc_pad)
    return out[:, :OUT]


def torch_reference(feat, w_conv, w_fc1, w_fc2, w_sa, b_sa, w_fc, b_fc):
    """Plain-JAX replica of the PyTorch head (with real NCHW convs) for checking."""
    dn = ('NCHW', 'OIHW', 'NCHW')
    conv = lambda x, w, pad: jax.lax.conv_general_dilated(
        x, w, (1, 1), pad, dimension_numbers=dn)
    x = feat[:, :, None, None]                               # unsqueeze(2).unsqueeze(3)
    x = conv(x, w_conv, 'VALID')                             # 1x1 conv, no bias
    # ChannelAttention
    mlp = lambda v: conv(jnp.maximum(conv(v, w_fc1, 'VALID'), 0.0), w_fc2, 'VALID')
    avg_p = jnp.mean(x, axis=(2, 3), keepdims=True)
    max_p = jnp.max(x, axis=(2, 3), keepdims=True)
    x = jax.nn.sigmoid(mlp(avg_p) + mlp(max_p)) * x
    # SpatialAttention
    avg_c = jnp.mean(x, axis=1, keepdims=True)
    max_c = jnp.max(x, axis=1, keepdims=True)
    s = jnp.concatenate([avg_c, max_c], axis=1)
    s = conv(s, w_sa, [(3, 3), (3, 3)]) + b_sa[None, :, None, None]
    x = jax.nn.sigmoid(s) * x
    x = jnp.mean(x, axis=(2, 3))                             # adaptive_avg_pool2d + flatten
    return x @ w_fc.T + b_fc


if __name__ == "__main__":
    key = jax.random.PRNGKey(0)
    ks = jax.random.split(key, 8)
    feat = jax.random.normal(ks[0], (B, C), jnp.float32)                  # backbone features
    w_conv = jax.random.normal(ks[1], (C, C, 1, 1), jnp.float32) * 0.05   # Conv2d(C, C, 1, bias=False)
    w_fc1 = jax.random.normal(ks[2], (CR, C, 1, 1), jnp.float32) * 0.05   # Conv2d(C, C//16, 1)
    w_fc2 = jax.random.normal(ks[3], (C, CR, 1, 1), jnp.float32) * 0.05   # Conv2d(C//16, C, 1)
    w_sa = jax.random.normal(ks[4], (1, 2, 7, 7), jnp.float32) * 0.05     # Conv2d(2, 1, 7, pad=3)
    b_sa = jax.random.normal(ks[5], (1,), jnp.float32) * 0.05
    w_fc = jax.random.normal(ks[6], (OUT, C), jnp.float32) * 0.05         # Linear(C, 28)
    b_fc = jax.random.normal(ks[7], (OUT,), jnp.float32) * 0.05

    packed = pack_weights(w_conv, w_fc1, w_fc2, w_sa, b_sa, w_fc, b_fc)
    out = keypoint_head(feat, *packed)
    out = jax.block_until_ready(out)

    ref = torch_reference(feat, w_conv, w_fc1, w_fc2, w_sa, b_sa, w_fc, b_fc)
    assert out.shape == (B, OUT)
    assert jnp.allclose(out, ref, atol=1e-4, rtol=1e-4), "mismatch vs reference"
    print("KERNEL_OK")
</pallas_src>

<mosaic_0001>
module attributes {stable_mosaic.version = 11 : i64} {
  func.func @keypoint_head_kernel(%arg0: memref<3xf32, #tpu.memory_space<smem>>, %arg1: memref<8x128xf32, #tpu.memory_space<vmem>>, %arg2: memref<128x512xf32, #tpu.memory_space<vmem>>, %arg3: memref<1x128xf32, #tpu.memory_space<vmem>>, %arg4: memref<8x128xf32, #tpu.memory_space<vmem>>) attributes {dimension_semantics = [], scalar_prefetch = 0 : i64, scratch_operands = 0 : i64, tpu.core_type = #tpu.core_type<tc>} {
    %c0 = arith.constant 0 : index
    %c0_0 = arith.constant 0 : index
    %0 = vector.load %arg1[%c0, %c0_0] : memref<8x128xf32, #tpu.memory_space<vmem>>, vector<8x128xf32>
    %c0_1 = arith.constant 0 : index
    %c0_2 = arith.constant 0 : index
    %1 = vector.load %arg2[%c0_1, %c0_2] : memref<128x512xf32, #tpu.memory_space<vmem>>, vector<128x256xf32>
    %cst = arith.constant dense<0.000000e+00> : vector<8x256xf32>
    %2 = tpu.matmul %0, %1, %cst {dimension_numbers = #tpu.dot_dimension_numbers<[1], [0], [0], [1], [0, 0, 1, 1], [], []>} : vector<8x128xf32>, vector<128x256xf32>, vector<8x256xf32> -> vector<8x256xf32>
    %3 = vector.extract_strided_slice %2 {offsets = [0, 0], sizes = [8, 128], strides = [1, 1]} : vector<8x256xf32> to vector<8x128xf32>
    %4 = vector.extract_strided_slice %2 {offsets = [0, 128], sizes = [8, 128], strides = [1, 1]} : vector<8x256xf32> to vector<8x128xf32>
    %cst_3 = arith.constant 0.000000e+00 : f32
    %5 = vector.broadcast %cst_3 : f32 to vector<8x128xf32>
    %6 = arith.maximumf %4, %5 : vector<8x128xf32>
    %c0_4 = arith.constant 0 : index
    %c256 = arith.constant 256 : index
    %7 = vector.load %arg2[%c0_4, %c256] : memref<128x512xf32, #tpu.memory_space<vmem>>, vector<128x128xf32>
    %cst_5 = arith.constant dense<0.000000e+00> : vector<8x128xf32>
    %8 = tpu.matmul %6, %7, %cst_5 {dimension_numbers = #tpu.dot_dimension_numbers<[1], [0], [0], [1], [0, 0, 1, 1], [], []>} : vector<8x128xf32>, vector<128x128xf32>, vector<8x128xf32> -> vector<8x128xf32>
    %9 = arith.negf %8 : vector<8x128xf32>
    %10 = math.exp %9 : vector<8x128xf32>
    %cst_6 = arith.constant 1.000000e+00 : f32
    %11 = vector.broadcast %cst_6 : f32 to vector<8x128xf32>
    %12 = arith.addf %11, %10 : vector<8x128xf32>
    %13 = arith.divf %11, %12 : vector<8x128xf32>
    %14 = arith.mulf %13, %3 : vector<8x128xf32>
    %cst_7 = arith.constant dense<0.000000e+00> : vector<8xf32>
    %15 = vector.multi_reduction <add>, %14, %cst_7 [1] : vector<8x128xf32> to vector<8xf32>
    %16 = vector.shape_cast %15 : vector<8xf32> to vector<8x1xf32>
    %cst_8 = arith.constant dense<0xFF800000> : vector<8xf32>
    %17 = vector.multi_reduction <maximumf>, %14, %cst_8 [1] : vector<8x128xf32> to vector<8xf32>
    %18 = vector.shape_cast %17 : vector<8xf32> to vector<8x1xf32>
    %c0_9 = arith.constant 0 : index
    %19 = memref.load %arg0[%c0_9] : memref<3xf32, #tpu.memory_space<smem>>
    %20 = vector.broadcast %19 : f32 to vector<8x1xf32>
    %21 = arith.mulf %20, %16 : vector<8x1xf32>
    %c1 = arith.constant 1 : index
    %22 = memref.load %arg0[%c1] : memref<3xf32, #tpu.memory_space<smem>>
    %23 = vector.broadcast %22 : f32 to vector<8x1xf32>
    %24 = arith.mulf %23, %18 : vector<8x1xf32>
    %25 = arith.addf %21, %24 : vector<8x1xf32>
    %c2 = arith.constant 2 : index
    %26 = memref.load %arg0[%c2] : memref<3xf32, #tpu.memory_space<smem>>
    %27 = vector.broadcast %26 : f32 to vector<8x1xf32>
    %28 = arith.addf %25, %27 : vector<8x1xf32>
    %29 = arith.negf %28 : vector<8x1xf32>
    %30 = math.exp %29 : vector<8x1xf32>
    %cst_10 = arith.constant 1.000000e+00 : f32
    %31 = vector.broadcast %cst_10 : f32 to vector<8x1xf32>
    %32 = arith.addf %31, %30 : vector<8x1xf32>
    %33 = arith.divf %31, %32 : vector<8x1xf32>
    %34 = vector.broadcast %33 : vector<8x1xf32> to vector<8x128xf32>
    %35 = arith.mulf %34, %14 : vector<8x128xf32>
    %c0_11 = arith.constant 0 : index
    %c384 = arith.constant 384 : index
    %36 = vector.load %arg2[%c0_11, %c384] : memref<128x512xf32, #tpu.memory_space<vmem>>, vector<128x128xf32>
    %cst_12 = arith.constant dense<0.000000e+00> : vector<8x128xf32>
    %37 = tpu.matmul %35, %36, %cst_12 {dimension_numbers = #tpu.dot_dimension_numbers<[1], [0], [0], [1], [0, 0, 1, 1], [], []>} : vector<8x128xf32>, vector<128x128xf32>, vector<8x128xf32> -> vector<8x128xf32>
    %c0_13 = arith.constant 0 : index
    %c0_14 = arith.constant 0 : index
    %38 = vector.load %arg3[%c0_13, %c0_14] : memref<1x128xf32, #tpu.memory_space<vmem>>, vector<1x128xf32>
    %39 = vector.broadcast %38 : vector<1x128xf32> to vector<8x128xf32>
    %40 = arith.addf %37, %39 : vector<8x128xf32>
    %c0_15 = arith.constant 0 : index
    %c0_16 = arith.constant 0 : index
    %41 = vector.load %arg4[%c0_15, %c0_16] : memref<8x128xf32, #tpu.memory_space<vmem>>, vector<8x128xf32>
    tpu.vector_store %arg4[%c0_15, %c0_16], %40 {strides = array<i32>} : memref<8x128xf32, #tpu.memory_space<vmem>>, vector<8x128xf32>,
    return
  }
}

</mosaic_0001>

<bundles_post_ra>
// kernel: keypoint_head.1
= control target key start
LH: loop header
LB: loop body
LE: loop exit
PB: predicated region body
PF: predicated region fallthrough
CT: control target
= control target key end

     0   :  { %9 = vsyncpa [#allocation5], 0  ;;  %s680_s0 = inlined_call_operand.vmem [shape: f32[3], index: 0, kind: input, shape index: {}]   ;;  %s681_s1 = inlined_call_operand.hbm [shape: f32[8,128], index: 1, kind: input, shape index: {}]   ;;  %s682_s2 = inlined_call_operand.hbm [shape: f32[128,512], index: 2, kind: input, shape index: {}]   ;;  %s683_s3 = inlined_call_operand.vmem [shape: f32[1,128], index: 3, kind: input, shape index: {}]   ;;  %s684_s4 = inlined_call_operand.hbm [shape: f32[8,128], index: 4, kind: output, shape index: {}]  }
   0x1   :  { %10 = vsyncpa [#allocation3], 0 }
   0x2   :  { %11 = vsyncpa [#allocation8], 0 }
   0x3   :  { %12 = vsyncpa [#allocation4], 0  ;;  %s19_s17 = sshll.u32 %s680_s0, 4  ;;  %s20_s17 = int_to_ptr.vmem [resolvable:$true] %s19_s17 }
   0x4   :  { %s512_s18 = scalar_lea.vmem %s20_s17, 16  ;;  %p517_p1 = scmp.lt.s32.totalorder %s20_s17, %s20_s17 }
   0x5   :  { %p513_p0 = scmp.ne.s32.totalorder %s20_s17, %s512_s18  ;;  %p518_p2 = scmp.lt.s32.totalorder %s512_s18, %s512_s18 }
   0x7   :  { %p519_p3 = por %p518_p2, %p517_p1 }
   0x9   :  { %p520_p4 = pnand %p519_p3, %p513_p0 }
   0xb   :  { %523 = shalt.err (!%p520_p4)
}
   0xc   :  { %s592_s19 = smov [#allocation2]   ;;  %s593_s20 = smov [#allocation6]  }
   0xd   :  { %22 = dma.vmem_to_smem %s20_s17, 16, %s592_s19, [#allocation5]  }
   0xe   :  { %s29_s21 = sshll.u32 %s593_s20, 4  ;;  %s594_s22 = smov [#allocation7]   ;;  %s30_s21 = int_to_ptr.vmem [resolvable:$true] %s29_s21 }
   0xf   :  { %s38_s23 = sshll.u32 %s594_s22, 4  ;;  %s532_s24 = scalar_lea.vmem %s30_s21, 128  ;;  %s39_s23 = int_to_ptr.vmem [resolvable:$true] %s38_s23 }
  0x10   :  { %p533_p5 = scmp.ne.s32.totalorder %s30_s21, %s532_s24  ;;  %p537_p6 = scmp.lt.s32.totalorder %s30_s21, %s30_s21 }
  0x11   :  { %p538_p7 = scmp.lt.s32.totalorder %s532_s24, %s532_s24 }
  0x13   :  { %p539_p8 = por %p538_p7, %p537_p6 }
  0x15   :  { %p540_p9 = pnand %p539_p8, %p533_p5 }
  0x17   :  { %543 = shalt.err (!%p540_p9)
}
  0x18   :  { %32 = dma.hbm_to_vmem [thread:$0]  %s681_s1, 128, %s30_s21, [#allocation3]  }
  0x19   :  { %s552_s26 = scalar_lea.vmem %s39_s23, 8192  ;;  %p557_p11 = scmp.lt.s32.totalorder %s39_s23, %s39_s23 }
  0x1a   :  { %p553_p10 = scmp.ne.s32.totalorder %s39_s23, %s552_s26  ;;  %p558_p12 = scmp.lt.s32.totalorder %s552_s26, %s552_s26 }
  0x1c   :  { %p559_p13 = por %p558_p12, %p557_p11 }
  0x1e   :  { %p560_p0 = pnand %p559_p13, %p553_p10 }
  0x20   :  { %563 = shalt.err (!%p560_p0)
}
  0x21   :  { %s595_s27 = smov 512   ;;  %s596_s28 = smov 32  }
  0x22   :  { %44 = dma.hbm_to_vmem [thread:$0]  %s682_s2, 8192, %s39_s23, [#allocation8], %s595_s27, %s595_s27, %s596_s28  }
  0x23   :  { %584 = dma.done.wait [#allocation5], 16  }
  0x24   :  { %585 = vsyncadd [#allocation5], 4294967280 }
  0x25   :  { %586 = dma.done.wait [#allocation3], 128  }
  0x26   :  { %587 = vsyncadd [#allocation3], 4294967168 }
  0x27   :  { %588 = dma.done.wait [#allocation8], 8192  }
  0x28   :  { %589 = vsyncadd [#allocation8], 4294959104 }
  0x29   :  { %56 = sfence }
  0x2a   :  { %v89_v0 = vld [vmem:[#allocation7 + $0x1e8] sm:$0xff]  ;;  %v88_v1 = vld [vmem:[#allocation7 + $0x1e0] sm:$0xff]  ;;  %v597_v4 = vmov 0.0   ;;  %v177_v15 = vld [vmem:[#allocation7 + $0x1f0] sm:$0xff]  ;;  %vm598_vm0 = vmmov 0   ;;  %s259_s1 = sld [smem:[#allocation2]] }
  0x2b   :  { %v87_v2 = vld [vmem:[#allocation7 + $0x1c8] sm:$0xff]  ;;  %90 = vmatprep.subr.mxu0 %v89_v0  ;;  %v86_v3 = vld [vmem:[#allocation7 + $0x1c0] sm:$0xff]  ;;  %154 = vmatprep.mubr.f32.mxu0 %v597_v4  ;;  %v176_v16 = vld [vmem:[#allocation7 + $0x1d0] sm:$0xff]  ;;  %s388_s2 = sld [smem:[#allocation2 + $0x1]]  ;;  %s599_s8 = smov [#allocation9]  }
  0x2c   :  { %91 = vmatpush1.msra.mxu0 %v88_v1  ;;  %v85_v5 = vld [vmem:[#allocation7 + $0x1a8] sm:$0xff]  ;;  %426 = vmatprep.subr.mxu1 %v597_v4  ;;  %v84_v6 = vld [vmem:[#allocation7 + $0x1a0] sm:$0xff]  ;;  %v175_v19 = vld [vmem:[#allocation7 + $0x1b0] sm:$0xff]  ;;  %s389_s5 = sld [smem:[#allocation2 + $0x2]]  ;;  %s376_s9 = sshll.u32 %s599_s8, 4  ;;  %s377_s9 = int_to_ptr.vmem [resolvable:$true] %s376_s9 }
  0x2d   :  { %92 = vmatprep.subr.mxu0 %v87_v2  ;;  %v83_v7 = vld [vmem:[#allocation7 + $0x188] sm:$0xff]  ;;  %v82_v8 = vld [vmem:[#allocation7 + $0x180] sm:$0xff]  ;;  %427 = vmatpush3.msra.mxu1 %v177_v15  ;;  %v174_v22 = vld [vmem:[#allocation7 + $0x190] sm:$0xff]  ;;  %s564_s10 = scalar_lea.vmem %s377_s9, 128  ;;  %p569_p2 = scmp.lt.s32.totalorder %s377_s9, %s377_s9 }
  0x2e   :  { %93 = vmatpush1.msra.mxu0 %v86_v3  ;;  %v81_v9 = vld [vmem:[#allocation7 + $0x168] sm:$0xff]  ;;  %v80_v10 = vld [vmem:[#allocation7 + $0x160] sm:$0xff]  ;;  %428 = vmatprep.subr.mxu1 %v597_v4  ;;  %v173_v25 = vld [vmem:[#allocation7 + $0x170] sm:$0xff]  ;;  %p565_p1 = scmp.ne.s32.totalorder %s377_s9, %s564_s10  ;;  %p570_p3 = scmp.lt.s32.totalorder %s564_s10, %s564_s10 }
  0x2f   :  { %94 = vmatprep.subr.mxu0 %v85_v5  ;;  %v79_v11 = vld [vmem:[#allocation7 + $0x148] sm:$0xff]  ;;  %v78_v12 = vld [vmem:[#allocation7 + $0x140] sm:$0xff]  ;;  %429 = vmatpush3.msra.mxu1 %v176_v16  ;;  %v172_v28 = vld [vmem:[#allocation7 + $0x150] sm:$0xff] }
  0x30   :  { %95 = vmatpush1.msra.mxu0 %v84_v6  ;;  %v77_v13 = vld [vmem:[#allocation7 + $0x128] sm:$0xff]  ;;  %v76_v14 = vld [vmem:[#allocation7 + $0x120] sm:$0xff]  ;;  %430 = vmatprep.subr.mxu1 %v597_v4  ;;  %v171_v31 = vld [vmem:[#allocation7 + $0x130] sm:$0xff]  ;;  %p571_p4 = por %p570_p3, %p569_p2 }
  0x31   :  { %96 = vmatprep.subr.mxu0 %v83_v7  ;;  %v75_v17 = vld [vmem:[#allocation7 + $0x108] sm:$0xff]  ;;  %v74_v18 = vld [vmem:[#allocation7 + $0x100] sm:$0xff]  ;;  %431 = vmatpush3.msra.mxu1 %v175_v19  ;;  %v170_v34 = vld [vmem:[#allocation7 + $0x110] sm:$0xff]  ;;  %v263_v15 = vstv %s388_s2 }
  0x32   :  { %97 = vmatpush1.msra.mxu0 %v82_v8  ;;  %v73_v20 = vld [vmem:[#allocation7 + $0xe8] sm:$0xff]  ;;  %v72_v21 = vld [vmem:[#allocation7 + $0xe0] sm:$0xff]  ;;  %432 = vmatprep.subr.mxu1 %v597_v4  ;;  %v169_v37 = vld [vmem:[#allocation7 + $0xf0] sm:$0xff]  ;;  %v267_v19 = vstv %s389_s5  ;;  %p572_p5 = pnand %p571_p4, %p565_p1 }
  0x33   :  { %98 = vmatprep.subr.mxu0 %v81_v9  ;;  %v71_v23 = vld [vmem:[#allocation7 + $0xc8] sm:$0xff]  ;;  %v70_v24 = vld [vmem:[#allocation7 + $0xc0] sm:$0xff]  ;;  %433 = vmatpush3.msra.mxu1 %v174_v22  ;;  %v168_v40 = vld [vmem:[#allocation7 + $0xd0] sm:$0xff] }
  0x34   :  { %99 = vmatpush1.msra.mxu0 %v80_v10  ;;  %v69_v26 = vld [vmem:[#allocation7 + $0xa8] sm:$0xff]  ;;  %v68_v27 = vld [vmem:[#allocation7 + $0xa0] sm:$0xff]  ;;  %434 = vmatprep.subr.mxu1 %v597_v4  ;;  %v167_v43 = vld [vmem:[#allocation7 + $0xb0] sm:$0xff] }
  0x35   :  { %100 = vmatprep.subr.mxu0 %v79_v11  ;;  %v67_v29 = vld [vmem:[#allocation7 + $0x88] sm:$0xff]  ;;  %435 = vmatpush3.msra.mxu1 %v173_v25  ;;  %v66_v30 = vld [vmem:[#allocation7 + $0x80] sm:$0xff]  ;;  %v57_v44 = vld [vmem:[#allocation6] sm:$0xff] }
  0x36   :  { %101 = vmatpush1.msra.mxu0 %v78_v12  ;;  %436 = vmatprep.subr.mxu1 %v597_v4  ;;  %v65_v32 = vld [vmem:[#allocation7 + $0x68] sm:$0xff]  ;;  %v64_v33 = vld [vmem:[#allocation7 + $0x60] sm:$0xff]  ;;  %v166_v45 = vld [vmem:[#allocation7 + $0x90] sm:$0xff] }
  0x37   :  { %102 = vmatprep.subr.mxu0 %v77_v13  ;;  %437 = vmatpush3.msra.mxu1 %v172_v28  ;;  %v63_v35 = vld [vmem:[#allocation7 + $0x48] sm:$0xff]  ;;  %v62_v36 = vld [vmem:[#allocation7 + $0x40] sm:$0xff]  ;;  %v165_v46 = vld [vmem:[#allocation7 + $0x70] sm:$0xff] }
  0x38   :  { %103 = vmatpush1.msra.mxu0 %v76_v14  ;;  %438 = vmatprep.subr.mxu1 %v597_v4  ;;  %v61_v38 = vld [vmem:[#allocation7 + $0x28] sm:$0xff]  ;;  %v60_v39 = vld [vmem:[#allocation7 + $0x20] sm:$0xff]  ;;  %v164_v47 = vld [vmem:[#allocation7 + $0x50] sm:$0xff]  ;;  %v260_v14 = vstv %s259_s1 }
  0x39   :  { %104 = vmatprep.subr.mxu0 %v75_v17  ;;  %439 = vmatpush3.msra.mxu1 %v171_v31  ;;  %v59_v41 = vld [vmem:[#allocation7 + $0x8] sm:$0xff]  ;;  %v58_v42 = vld [vmem:[#allocation7] sm:$0xff]  ;;  %v163_v48 = vld [vmem:[#allocation7 + $0x30] sm:$0xff] }
  0x3a   :  { %105 = vmatpush1.msra.mxu0 %v74_v18  ;;  %440 = vmatprep.subr.mxu1 %v597_v4  ;;  %v162_v49 = vld [vmem:[#allocation7 + $0x10] sm:$0xff]  ;;  %v291_v60 = vld [vmem:[#allocation7 + $0x1f8] sm:$0xff] }
  0x3b   :  { %106 = vmatprep.subr.mxu0 %v73_v20  ;;  %441 = vmatpush3.msra.mxu1 %v170_v34  ;;  %v290_v61 = vld [vmem:[#allocation7 + $0x1d8] sm:$0xff] }
  0x3c   :  { %107 = vmatpush1.msra.mxu0 %v72_v21  ;;  %442 = vmatprep.subr.mxu1 %v597_v4  ;;  %v289_v62 = vld [vmem:[#allocation7 + $0x1b8] sm:$0xff] }
  0x3d   :  { %108 = vmatprep.subr.mxu0 %v71_v23  ;;  %443 = vmatpush3.msra.mxu1 %v169_v37  ;;  %v288_v63 = vld [vmem:[#allocation7 + $0x198] sm:$0xff] }
  0x3e   :  { %109 = vmatpush1.msra.mxu0 %v70_v24  ;;  %444 = vmatprep.subr.mxu1 %v597_v4  ;;  %v287_v0 = vld [vmem:[#allocation7 + $0x178] sm:$0xff] }
  0x3f   :  { %110 = vmatprep.subr.mxu0 %v69_v26  ;;  %445 = vmatpush3.msra.mxu1 %v168_v40  ;;  %v286_v1 = vld [vmem:[#allocation7 + $0x158] sm:$0xff] }
  0x40   :  { %111 = vmatpush1.msra.mxu0 %v68_v27  ;;  %446 = vmatprep.subr.mxu1 %v597_v4  ;;  %v285_v2 = vld [vmem:[#allocation7 + $0x138] sm:$0xff] }
  0x41   :  { %112 = vmatprep.subr.mxu0 %v67_v29  ;;  %447 = vmatpush3.msra.mxu1 %v167_v43  ;;  %v284_v3 = vld [vmem:[#allocation7 + $0x118] sm:$0xff] }
  0x42   :  { %113 = vmatpush1.msra.mxu0 %v66_v30  ;;  %448 = vmatprep.subr.mxu1 %v597_v4  ;;  %v283_v5 = vld [vmem:[#allocation7 + $0xf8] sm:$0xff] }
  0x43   :  { %114 = vmatprep.subr.mxu0 %v65_v32  ;;  %449 = vmatpush3.msra.mxu1 %v166_v45  ;;  %v282_v6 = vld [vmem:[#allocation7 + $0xd8] sm:$0xff] }
  0x44   :  { %115 = vmatpush1.msra.mxu0 %v64_v33  ;;  %450 = vmatprep.subr.mxu1 %v597_v4  ;;  %v281_v7 = vld [vmem:[#allocation7 + $0xb8] sm:$0xff] }
  0x45   :  { %116 = vmatprep.subr.mxu0 %v63_v35  ;;  %451 = vmatpush3.msra.mxu1 %v165_v46  ;;  %v280_v8 = vld [vmem:[#allocation7 + $0x98] sm:$0xff] }
  0x46   :  { %117 = vmatpush1.msra.mxu0 %v62_v36  ;;  %452 = vmatprep.subr.mxu1 %v597_v4  ;;  %v279_v9 = vld [vmem:[#allocation7 + $0x78] sm:$0xff] }
  0x47   :  { %118 = vmatprep.subr.mxu0 %v61_v38  ;;  %453 = vmatpush3.msra.mxu1 %v164_v47  ;;  %v278_v10 = vld [vmem:[#allocation7 + $0x58] sm:$0xff] }
  0x48   :  { %119 = vmatpush1.msra.mxu0 %v60_v39  ;;  %454 = vmatprep.subr.mxu1 %v597_v4  ;;  %v277_v11 = vld [vmem:[#allocation7 + $0x38] sm:$0xff] }
  0x49   :  { %120 = vmatprep.subr.mxu0 %v59_v41  ;;  %455 = vmatpush3.msra.mxu1 %v163_v48  ;;  %v276_v12 = vld [vmem:[#allocation7 + $0x18] sm:$0xff] }
  0x4a   :  { %121 = vmatpush1.msra.mxu0 %v58_v42  ;;  %456 = vmatprep.subr.mxu1 %v597_v4  ;;  %v391_v26 = vld [vmem:[%s683_s3] ss:$0 sm:$0xff] }
  0x4b   :  { %155 = vmatmul.mubr.f32.vlgmr.msra.gmra.mxu0 %v57_v44  ;;  %461 = vmatprep.subr.mxu0 %v597_v4 }
  0x4c   :  { %457 = vmatpush3.msra.mxu1 %v162_v49  ;;  %458 = vmatprep.mubr.msk.f32.mxu1 %vm598_vm0, %v597_v4 }
  0x4d   :  { %493 = vmatprep.mubr.msk.f32.mxu0 %vm598_vm0, %v597_v4  ;;  %462 = vmatpush3.msra.mxu0 %v291_v60 }
  0x4e   :  { %463 = vmatprep.subr.mxu0 %v597_v4 }
  0x4f   :  { %464 = vmatpush3.msra.mxu0 %v290_v61 }
  0x50   :  { %465 = vmatprep.subr.mxu0 %v597_v4 }
  0x51   :  { %466 = vmatpush3.msra.mxu0 %v289_v62 }
  0x52   :  { %467 = vmatprep.subr.mxu0 %v597_v4 }
  0x53   :  { %468 = vmatpush3.msra.mxu0 %v288_v63 }
  0x54   :  { %469 = vmatprep.subr.mxu0 %v597_v4 }
  0x55   :  { %470 = vmatpush3.msra.mxu0 %v287_v0 }
  0x56   :  { %471 = vmatprep.subr.mxu0 %v597_v4 }
  0x57   :  { %472 = vmatpush3.msra.mxu0 %v286_v1 }
  0x58   :  { %473 = vmatprep.subr.mxu0 %v597_v4 }
  0x59   :  { %474 = vmatpush3.msra.mxu0 %v285_v2 }
  0x5a   :  { %475 = vmatprep.subr.mxu0 %v597_v4 }
  0x5b   :  { %476 = vmatpush3.msra.mxu0 %v284_v3 }
  0x5c   :  { %477 = vmatprep.subr.mxu0 %v597_v4 }
  0x5d   :  { %478 = vmatpush3.msra.mxu0 %v283_v5 }
  0x5e   :  { %479 = vmatprep.subr.mxu0 %v597_v4 }
  0x5f   :  { %480 = vmatpush3.msra.mxu0 %v282_v6 }
  0x60   :  { %481 = vmatprep.subr.mxu0 %v597_v4 }
  0x61   :  { %482 = vmatpush3.msra.mxu0 %v281_v7 }
  0x62   :  { %483 = vmatprep.subr.mxu0 %v597_v4 }
  0x63   :  { %484 = vmatpush3.msra.mxu0 %v280_v8 }
  0x64   :  { %485 = vmatprep.subr.mxu0 %v597_v4 }
  0x65   :  { %486 = vmatpush3.msra.mxu0 %v279_v9 }
  0x66   :  { %487 = vmatprep.subr.mxu0 %v597_v4 }
  0x67   :  { %488 = vmatpush3.msra.mxu0 %v278_v10 }
  0x68   :  { %489 = vmatprep.subr.mxu0 %v597_v4 }
  0x69   :  { %490 = vmatpush3.msra.mxu0 %v277_v11 }
  0x6a   :  { %491 = vmatprep.subr.mxu0 %v597_v4 }
  0x6b   :  { %492 = vmatpush3.msra.mxu0 %v276_v12 }
 0x10b   :  { %v156_v50 = vpop.f32.mrf.mxu0 }
 0x10d   :  { %v158_v51 = vpop.f32.mrf.mxu0 }
 0x10e   :  { %v161_v52 = vmax.f32 %v158_v51, 0.0 }
 0x110   :  { %459 = vmatmul.mubr.f32.vlgmr.msra.gmra.mxu1 %v161_v52 }
 0x1d0   :  { %v244_v53 = vpop.f32.mrf.mxu1 }
 0x1d1   :  { %v387_v54 = vmul.f32 -1.442695, %v244_v53 }
 0x1d2   :  { %v460_v55 = vpop.f32.mrf.mxu1 }
 0x1d3   :  { %504 = vpow2.f32 %v387_v54 }
 0x1e0   :  { %v505_v56 = vpop.eup %504 }
 0x1e1   :  { %v251_v57 = vadd.f32 1.0, %v505_v56 }
 0x1e3   :  { %506 = vrcp.f32 %v251_v57 }
 0x1f0   :  { %v507_v58 = vpop.eup %506 }
 0x1f1   :  { %v654_v59 = vmul.f32 %v507_v58, %v156_v50 }
 0x1f3   :  { %255 = vadd.xlane.f32.xlu0 %v654_v59 }
 0x1f7   :  { %257 = vmax.xlane.f32.xlu0 %v654_v59 }
 0x27c   :  { %v256_v13 = vpop.xlane.xlu0 %255 }
 0x27d   :  { %v261_v17 = vmul.f32 %v260_v14, %v256_v13 }
 0x280   :  { %v258_v16 = vpop.xlane.xlu0 %257 }
 0x281   :  { %v264_v18 = vmul.f32 %v263_v15, %v258_v16 }
 0x283   :  { %v265_v20 = vadd.f32 %v264_v18, %v261_v17 }
 0x285   :  { %v268_v21 = vadd.f32 %v267_v19, %v265_v20 }
 0x287   :  { %v390_v22 = vmul.f32 -1.442695, %v268_v21 }
 0x289   :  { %508 = vpow2.f32 %v390_v22 }
 0x296   :  { %v509_v23 = vpop.eup %508 }
 0x297   :  { %v272_v24 = vadd.f32 1.0, %v509_v23 }
 0x299   :  { %510 = vrcp.f32 %v272_v24 }
 0x2a6   :  { %v511_v25 = vpop.eup %510 }
 0x2a7   :  { %v275_v4 = vmul.f32 %v511_v25, %v654_v59 }
 0x2a9   :  { %494 = vmatmul.mubr.f32.vlgmr.msra.gmra.mxu0 %v275_v4 }
 0x369   :  { %v365_v27 = vpop.f32.mrf.mxu0 }
 0x36a   :  { %v366_v28 = vadd.f32 %v391_v26, %v365_v27 }
 0x36b   :  { %v495_v29 = vpop.f32.mrf.mxu0 }
 0x36c   :  { %369 = vst [vmem:[#allocation9] sm:$0xff] %v366_v28 }
 0x36d   :  { %575 = shalt.err (!%p572_p5)
}
 0x36e   :  { %379 = dma.vmem_to_hbm [thread:$0]  %s377_s9, 128, %s684_s4, [#allocation4]  }
 0x36f   :  { %590 = dma.done.wait [#allocation4], 128  }
 0x370   :  { %591 = vsyncadd [#allocation4], 4294967168 }
 0x371   :  { %383 = vsyncpa [#allocation3], 1 }
 0x372   :  { %384 = vsyncpa [#allocation8], 1 }
 0x373   :  { %385 = vsyncpa [#allocation4], 1 }
 0x374   :  { %386 = vsyncpa [#allocation5], 1 }

</bundles_post_ra>
